<compile_context>
chip_gen: v5e
topology: v5e:2x2
jax: 0.10.0
libtpu: 0.0.40
codegen_flags: <defaults>
</compile_context>

<pallas_src>
import functools

import jax
import jax.numpy as jnp
from jax.experimental import pallas as pl
from jax.experimental.pallas import tpu as pltpu


def _adv_fcnn_kernel(x_ref, w1_ref, b1_ref, w2_ref, b2_ref, prob_ref, feat_ref,
                     *, valid_h):
    # fc1 on the MXU with f32 accumulation (inputs may be bf16 on v6e/v7x).
    h = jnp.dot(x_ref[...], w1_ref[...], preferred_element_type=jnp.float32)
    h = h + b1_ref[...]                              # (1, H_pad) broadcasts over rows
    features = jnp.maximum(h, 0.0)                   # ReLU, (TB, H_pad)

    # Store only the valid H columns -> unpadded feature output (masked vst is
    # cheaper than 4x the HBM writeback + an extra XLA slice pass).
    feat_ref[...] = features[:, :valid_h].astype(feat_ref.dtype)

    # fc2 has N=1 -> degenerate MXU matmul. Do it on the otherwise-idle VPU/XLU:
    # lane-wise multiply + cross-lane reduction. Padded w2 columns are zero.
    logits = jnp.sum(features * w2_ref[...], axis=-1, keepdims=True) + b2_ref[0]

    # Numerically-stable exact sigmoid (exp on EUP; the divide is free since the
    # kernel is memory-bound, and this matches torch.sigmoid closely).
    z = jnp.exp(-jnp.abs(logits))
    sig = jnp.where(logits >= 0, 1.0 / (1.0 + z), z / (1.0 + z))
    prob_ref[...] = sig.astype(prob_ref.dtype)


def _round_up(n, m):
    return ((n + m - 1) // m) * m


def _cdiv(a, b):
    return (a + b - 1) // b


def adversarial_fcnn_forward(x, w1, b1, w2, b2, *, block_rows=1024, compute_dtype=None):
    """Forward pass of AdversarialFCNN.

    x: (B, D_in); w1: (D_in, H); b1: (H,); w2: (H, 1); b2: (1,).
    Returns (probs (B, 1), features (B, H)), matching the PyTorch module.
    compute_dtype=jnp.bfloat16 casts x/w1 for the fc1 MXU dot (v6e/v7x win);
    accumulation and outputs stay f32.
    """
    B, D_in = x.shape
    assert w1.shape[0] == D_in
    H = w1.shape[1]
    out_dtype = x.dtype

    # Hidden dim padded only for the fc1 matmul (lane-dense / MXU-aligned N).
    H_pad = max(128, _round_up(H, 128))

    x_dtype = compute_dtype if compute_dtype is not None else x.dtype
    w_dtype = compute_dtype if compute_dtype is not None else jnp.float32
    x_isz = jnp.dtype(x_dtype).itemsize
    w_isz = jnp.dtype(w_dtype).itemsize
    o_isz = jnp.dtype(out_dtype).itemsize

    # Per-generation VMEM budget (v7x has only 64 MiB physical per TC).
    try:
        vmem_cap = int(pltpu.get_tpu_info().vmem_capacity_bytes)
    except Exception:
        vmem_cap = 64 * 1024 * 1024
    budget = vmem_cap // 2

    def vmem_need(tb):
        tiles = tb * D_in * x_isz + tb * H * o_isz + tb * o_isz      # x, feat, prob tiles
        resident = D_in * H_pad * w_isz + 2 * H_pad * 4 + 128        # w1, b1, w2 row
        return 2 * (tiles + resident)                                # double-buffered

    # Tile selection: minimize batch padding, feed both v7x TCs, fit VMEM.
    num_tiles = _cdiv(B, block_rows)
    if B >= 16:
        num_tiles = max(num_tiles, 2)        # grid>=2 so "parallel" uses both v7x TCs
    while True:
        TB = _round_up(_cdiv(B, num_tiles), 8)
        if vmem_need(TB) <= budget or TB <= 8:
            break
        num_tiles += 1
    B_pad = num_tiles * TB
    # TODO(synk): if the resident w1 alone exceeds the VMEM budget (very large
    # D_in*H), add a K/H grid axis and tile w1 instead of keeping it whole.

    vmem_limit = int(min(vmem_cap, max(8 * 1024 * 1024, 2 * vmem_need(TB))))

    # Inputs: skip the zero-pad copy of x entirely when no batch padding is needed.
    x_in = x
    if compute_dtype is not None and x_in.dtype != compute_dtype:
        x_in = x_in.astype(compute_dtype)
    if B_pad != B:
        x_in = jnp.zeros((B_pad, D_in), x_in.dtype).at[:B, :].set(x_in)

    # Weight padding (zero pad keeps the math exact; padded feature cols are 0).
    if H_pad != H:
        w1_p = jnp.zeros((D_in, H_pad), jnp.float32).at[:, :H].set(w1.astype(jnp.float32))
        b1_p = jnp.zeros((1, H_pad), jnp.float32).at[0, :H].set(b1.astype(jnp.float32))
        w2_row = jnp.zeros((1, H_pad), jnp.float32).at[0, :H].set(
            w2.reshape(H).astype(jnp.float32))
    else:
        w1_p = w1.astype(jnp.float32)
        b1_p = b1.reshape(1, H).astype(jnp.float32)
        w2_row = w2.reshape(1, H).astype(jnp.float32)
    if compute_dtype is not None:
        w1_p = w1_p.astype(compute_dtype)
    b2_1d = b2.reshape(1).astype(jnp.float32)

    kernel = functools.partial(_adv_fcnn_kernel, valid_h=H)

    probs_p, feats_p = pl.pallas_call(
        kernel,
        out_shape=(
            jax.ShapeDtypeStruct((B_pad, 1), out_dtype),   # sigmoid output
            jax.ShapeDtypeStruct((B_pad, H), out_dtype),   # relu features (unpadded H)
        ),
        grid=(num_tiles,),
        in_specs=[
            pl.BlockSpec((TB, D_in), lambda i: (i, 0)),      # x: tiled over batch
            pl.BlockSpec((D_in, H_pad), lambda i: (0, 0)),   # w1: resident
            pl.BlockSpec((1, H_pad), lambda i: (0, 0)),      # b1: resident
            pl.BlockSpec((1, H_pad), lambda i: (0, 0)),      # w2 (as row): resident
            pl.BlockSpec(memory_space=pltpu.MemorySpace.SMEM),  # b2: scalar in SMEM
        ],
        out_specs=(
            pl.BlockSpec((TB, 1), lambda i: (i, 0)),
            pl.BlockSpec((TB, H), lambda i: (i, 0)),
        ),
        compiler_params=pltpu.CompilerParams(
            dimension_semantics=("parallel",),   # shard batch tiles across v7x's 2 TCs
            vmem_limit_bytes=vmem_limit,
        ),
    )(x_in, w1_p, b1_p, w2_row, b2_1d)

    if B_pad != B:
        probs_p = probs_p[:B]
        feats_p = feats_p[:B]
    return probs_p, feats_p


def init_params(key, input_size, hidden_size, dtype=jnp.float32):
    """Deterministic init mimicking PyTorch nn.Linear default (U[-1/sqrt(fan_in), +])."""
    k1, k2, k3, k4 = jax.random.split(key, 4)
    bound1 = 1.0 / jnp.sqrt(input_size)
    bound2 = 1.0 / jnp.sqrt(hidden_size)
    # Stored as (in, out) = transpose of PyTorch's (out, in) weight layout.
    w1 = jax.random.uniform(k1, (input_size, hidden_size), dtype, -bound1, bound1)
    b1 = jax.random.uniform(k2, (hidden_size,), dtype, -bound1, bound1)
    w2 = jax.random.uniform(k3, (hidden_size, 1), dtype, -bound2, bound2)
    b2 = jax.random.uniform(k4, (1,), dtype, -bound2, bound2)
    return w1, b1, w2, b2


def _reference(x, w1, b1, w2, b2):
    feat = jnp.maximum(x @ w1 + b1, 0.0)
    return jax.nn.sigmoid(feat @ w2 + b2), feat


if __name__ == "__main__":
    key = jax.random.PRNGKey(0)
    kx, kp, kx2, kx3 = jax.random.split(key, 4)

    input_size = 16
    hidden_size = 32
    w1, b1, w2, b2 = init_params(kp, input_size, hidden_size)

    # Small case (matches the module's typical usage): single-tile path, no padding.
    batch = 8
    x = jax.random.normal(kx, (batch, input_size), jnp.float32)
    probs, features = adversarial_fcnn_forward(x, w1, b1, w2, b2)
    jax.block_until_ready((probs, features))

    probs_ref, feat_ref = _reference(x, w1, b1, w2, b2)
    assert probs.shape == (batch, 1) and features.shape == (batch, hidden_size)
    assert jnp.allclose(probs, probs_ref, atol=2e-3, rtol=2e-3), "sigmoid output mismatch"
    assert jnp.allclose(features, feat_ref, atol=2e-3, rtol=2e-3), "features mismatch"

    # Multi-tile grid + batch-padding path (2 tiles of 272 rows -> 544, not 1024).
    batch2 = 530
    x2 = jax.random.normal(kx2, (batch2, input_size), jnp.float32)
    probs2, features2 = adversarial_fcnn_forward(x2, w1, b1, w2, b2)
    jax.block_until_ready((probs2, features2))
    probs2_ref, feat2_ref = _reference(x2, w1, b1, w2, b2)
    assert probs2.shape == (batch2, 1) and features2.shape == (batch2, hidden_size)
    assert jnp.allclose(probs2, probs2_ref, atol=2e-3, rtol=2e-3), "tiled sigmoid mismatch"
    assert jnp.allclose(features2, feat2_ref, atol=2e-3, rtol=2e-3), "tiled features mismatch"

    # bf16 compute path (fc1 MXU inputs in bf16, f32 accumulation / outputs).
    batch3 = 32
    x3 = jax.random.normal(kx3, (batch3, input_size), jnp.float32)
    probs3, features3 = adversarial_fcnn_forward(x3, w1, b1, w2, b2,
                                                 compute_dtype=jnp.bfloat16)
    jax.block_until_ready((probs3, features3))
    probs3_ref, feat3_ref = _reference(x3, w1, b1, w2, b2)
    assert probs3.shape == (batch3, 1) and features3.shape == (batch3, hidden_size)
    assert jnp.allclose(probs3, probs3_ref, atol=3e-2, rtol=3e-2), "bf16 sigmoid mismatch"
    assert jnp.allclose(features3, feat3_ref, atol=3e-2, rtol=3e-2), "bf16 features mismatch"

    print("KERNEL_OK")
</pallas_src>

<mosaic_0001>
module attributes {stable_mosaic.version = 11 : i64} {
  func.func @_adv_fcnn_kernel(%arg0: i32, %arg1: memref<8x16xf32, #tpu.memory_space<vmem>>, %arg2: memref<16x128xf32, #tpu.memory_space<vmem>>, %arg3: memref<1x128xf32, #tpu.memory_space<vmem>>, %arg4: memref<1x128xf32, #tpu.memory_space<vmem>>, %arg5: memref<1xf32, #tpu.memory_space<smem>>, %arg6: memref<8x1xf32, #tpu.memory_space<vmem>>, %arg7: memref<8x32xf32, #tpu.memory_space<vmem>>) attributes {dimension_semantics = [#tpu.dimension_semantics<parallel>], iteration_bounds = array<i64: 1>, scalar_prefetch = 0 : i64, scratch_operands = 0 : i64, tpu.core_type = #tpu.core_type<tc>, window_params = [{transform_indices = @transform_0, window_bounds = array<i64: 8, 16>}, {pipeline_mode = #tpu.pipeline_mode<synchronous>, transform_indices = @transform_1, window_bounds = array<i64: 16, 128>}, {pipeline_mode = #tpu.pipeline_mode<synchronous>, transform_indices = @transform_2, window_bounds = array<i64: 1, 128>}, {pipeline_mode = #tpu.pipeline_mode<synchronous>, transform_indices = @transform_3, window_bounds = array<i64: 1, 128>}, {transform_indices = @transform_4, window_bounds = array<i64: 1>}, {transform_indices = @transform_5, window_bounds = array<i64: 8, 1>}, {transform_indices = @transform_6, window_bounds = array<i64: 8, 32>}]} {
    %c0 = arith.constant 0 : index
    %c0_0 = arith.constant 0 : index
    %0 = vector.load %arg1[%c0, %c0_0] : memref<8x16xf32, #tpu.memory_space<vmem>>, vector<8x16xf32>
    %c0_1 = arith.constant 0 : index
    %c0_2 = arith.constant 0 : index
    %1 = vector.load %arg2[%c0_1, %c0_2] : memref<16x128xf32, #tpu.memory_space<vmem>>, vector<16x128xf32>
    %cst = arith.constant dense<0.000000e+00> : vector<8x128xf32>
    %2 = tpu.matmul %0, %1, %cst {dimension_numbers = #tpu.dot_dimension_numbers<[1], [0], [0], [1], [0, 0, 1, 1], [], []>} : vector<8x16xf32>, vector<16x128xf32>, vector<8x128xf32> -> vector<8x128xf32>
    %c0_3 = arith.constant 0 : index
    %c0_4 = arith.constant 0 : index
    %3 = vector.load %arg3[%c0_3, %c0_4] : memref<1x128xf32, #tpu.memory_space<vmem>>, vector<1x128xf32>
    %4 = vector.broadcast %3 : vector<1x128xf32> to vector<8x128xf32>
    %5 = arith.addf %2, %4 : vector<8x128xf32>
    %cst_5 = arith.constant 0.000000e+00 : f32
    %6 = vector.broadcast %cst_5 : f32 to vector<8x128xf32>
    %7 = arith.maximumf %5, %6 : vector<8x128xf32>
    %8 = vector.extract_strided_slice %7 {offsets = [0, 0], sizes = [8, 32], strides = [1, 1]} : vector<8x128xf32> to vector<8x32xf32>
    %c0_6 = arith.constant 0 : index
    %c0_7 = arith.constant 0 : index
    %9 = vector.load %arg7[%c0_6, %c0_7] : memref<8x32xf32, #tpu.memory_space<vmem>>, vector<8x32xf32>
    tpu.vector_store %arg7[%c0_6, %c0_7], %8 {strides = array<i32>} : memref<8x32xf32, #tpu.memory_space<vmem>>, vector<8x32xf32>,
    %c0_8 = arith.constant 0 : index
    %c0_9 = arith.constant 0 : index
    %10 = vector.load %arg4[%c0_8, %c0_9] : memref<1x128xf32, #tpu.memory_space<vmem>>, vector<1x128xf32>
    %11 = vector.broadcast %10 : vector<1x128xf32> to vector<8x128xf32>
    %12 = arith.mulf %7, %11 : vector<8x128xf32>
    %cst_10 = arith.constant dense<0.000000e+00> : vector<8xf32>
    %13 = vector.multi_reduction <add>, %12, %cst_10 [1] : vector<8x128xf32> to vector<8xf32>
    %14 = vector.shape_cast %13 : vector<8xf32> to vector<8x1xf32>
    %c0_11 = arith.constant 0 : index
    %15 = memref.load %arg5[%c0_11] : memref<1xf32, #tpu.memory_space<smem>>
    %16 = vector.broadcast %15 : f32 to vector<8x1xf32>
    %17 = arith.addf %14, %16 : vector<8x1xf32>
    %18 = math.absf %17 : vector<8x1xf32>
    %cst_12 = arith.constant 0.000000e+00 : f32
    %19 = vector.broadcast %cst_12 : f32 to vector<8x1xf32>
    %20 = arith.subf %19, %18 : vector<8x1xf32>
    %21 = math.exp %20 : vector<8x1xf32>
    %cst_13 = arith.constant 0.000000e+00 : f32
    %22 = vector.broadcast %cst_13 : f32 to vector<8x1xf32>
    %23 = arith.cmpf oge, %17, %22 : vector<8x1xf32>
    %cst_14 = arith.constant 1.000000e+00 : f32
    %24 = vector.broadcast %cst_14 : f32 to vector<8x1xf32>
    %25 = arith.addf %24, %21 : vector<8x1xf32>
    %cst_15 = arith.constant 1.000000e+00 : f32
    %26 = vector.broadcast %cst_15 : f32 to vector<8x1xf32>
    %27 = arith.divf %26, %25 : vector<8x1xf32>
    %cst_16 = arith.constant 1.000000e+00 : f32
    %28 = vector.broadcast %cst_16 : f32 to vector<8x1xf32>
    %29 = arith.addf %28, %21 : vector<8x1xf32>
    %30 = arith.divf %21, %29 : vector<8x1xf32>
    %31 = arith.select %23, %27, %30 : vector<8x1xi1>, vector<8x1xf32>
    %c0_17 = arith.constant 0 : index
    %c0_18 = arith.constant 0 : index
    %32 = vector.load %arg6[%c0_17, %c0_18] : memref<8x1xf32, #tpu.memory_space<vmem>>, vector<8x1xf32>
    tpu.vector_store %arg6[%c0_17, %c0_18], %31 {strides = array<i32>} : memref<8x1xf32, #tpu.memory_space<vmem>>, vector<8x1xf32>,
    return
  }
  func.func @transform_0(%arg0: i32) -> (i32, i32) {
    %c0_i32 = arith.constant 0 : i32
    %c0_i32_0 = arith.constant 0 : i32
    return %arg0, %c0_i32 : i32, i32
  }
  func.func @transform_1(%arg0: i32) -> (i32, i32) {
    %c0_i32 = arith.constant 0 : i32
    %c0_i32_0 = arith.constant 0 : i32
    %c0_i32_1 = arith.constant 0 : i32
    return %c0_i32, %c0_i32_0 : i32, i32
  }
  func.func @transform_2(%arg0: i32) -> (i32, i32) {
    %c0_i32 = arith.constant 0 : i32
    %c0_i32_0 = arith.constant 0 : i32
    %c0_i32_1 = arith.constant 0 : i32
    return %c0_i32, %c0_i32_0 : i32, i32
  }
  func.func @transform_3(%arg0: i32) -> (i32, i32) {
    %c0_i32 = arith.constant 0 : i32
    %c0_i32_0 = arith.constant 0 : i32
    %c0_i32_1 = arith.constant 0 : i32
    return %c0_i32, %c0_i32_0 : i32, i32
  }
  func.func @transform_4(%arg0: i32) -> i32 {
    %c0_i32 = arith.constant 0 : i32
    %c0_i32_0 = arith.constant 0 : i32
    return %c0_i32 : i32
  }
  func.func @transform_5(%arg0: i32) -> (i32, i32) {
    %c0_i32 = arith.constant 0 : i32
    %c0_i32_0 = arith.constant 0 : i32
    return %arg0, %c0_i32 : i32, i32
  }
  func.func @transform_6(%arg0: i32) -> (i32, i32) {
    %c0_i32 = arith.constant 0 : i32
    %c0_i32_0 = arith.constant 0 : i32
    return %arg0, %c0_i32 : i32, i32
  }
}

</mosaic_0001>

<bundles_post_ra>
// kernel: tpu_custom_call.1
= control target key start
LH: loop header
LB: loop body
LE: loop exit
PB: predicated region body
PF: predicated region fallthrough
CT: control target
= control target key end

     0   :  { %13 = vsyncpa [#allocation4], 0  ;;  %s296_s0 = inlined_call_operand.hbm [shape: f32[8,16], index: 0, kind: input, shape index: {}]   ;;  %s297_s1 = inlined_call_operand.hbm [shape: f32[16,128], index: 1, kind: input, shape index: {}]   ;;  %s298_s2 = inlined_call_operand.vmem [shape: f32[1,128], index: 2, kind: input, shape index: {}]   ;;  %s299_s3 = inlined_call_operand.vmem [shape: f32[1,128], index: 3, kind: input, shape index: {}]   ;;  %s300_s4 = inlined_call_operand.<no memory space> [shape: f32[1], index: 4, kind: input, shape index: {}]   ;;  %s301_s5 = inlined_call_operand.vmem [shape: f32[8,1], index: 5, kind: output, shape index: {0}]   ;;  %s302_s6 = inlined_call_operand.hbm [shape: f32[8,32], index: 6, kind: output, shape index: {1}]  }
   0x1   :  { %14 = vsyncpa [#allocation7], 0 }
   0x2   :  { %15 = vsyncpa [#allocation5], 0  ;;  %s21_s23 = sshll.u32 %s296_s0, 4  ;;  %s235_s24 = smov [#allocation3]   ;;  %s22_s23 = int_to_ptr.hbm [resolvable:$true] %s21_s23 }
   0x3   :  { %s23_s25 = sshll.u32 %s235_s24, 4  ;;  %s31_s28 = sshll.u32 %s297_s1, 4  ;;  %s24_s25 = int_to_ptr.vmem [resolvable:$true] %s23_s25  ;;  %s32_s28 = int_to_ptr.hbm [resolvable:$true] %s31_s28 }
   0x4   :  { %26 = dma.hbm_to_vmem [thread:$0]  %s22_s23, 128, %s24_s25, [#allocation4]  }
   0x5   :  { %s236_s29 = smov [#allocation6]   ;;  %s237_s7 = smov 128  }
   0x6   :  { %s33_s30 = sshll.u32 %s236_s29, 4  ;;  %s238_s8 = smov 8   ;;  %s34_s30 = int_to_ptr.vmem [resolvable:$true] %s33_s30 }
   0x7   :  { %39 = dma.hbm_to_vmem [thread:$0]  %s32_s28, 256, %s34_s30, [#allocation7], %s237_s7, %s237_s7, %s238_s8  }
   0x8   :  { %229 = dma.done.wait [#allocation4], 128  }
   0x9   :  { %230 = vsyncadd [#allocation4], 4294967168 }
   0xa   :  { %231 = dma.done.wait [#allocation7], 256  }
   0xb   :  { %232 = vsyncadd [#allocation7], 4294967040  ;;  %v56_v0 = vld [vmem:[#allocation6 + $0x8] sm:$0xff]  ;;  %v55_v1 = vld [vmem:[#allocation6] sm:$0xff]  ;;  %vm61_vm0 = vcmask 130048   ;;  %vm86_vm1 = vcmask 261120   ;;  %v96_v9 = vstv %s300_s4 }
   0xc   :  { %79 = vmatpush.msra.mxu0 %v56_v0  ;;  %v54_v2 = vld [vmem:[#allocation3] sm:$0xff]  ;;  %s239_s11 = smov [#allocation8]   ;;  %s132_s15 = sshll.u32 %s302_s6, 4  ;;  %vm121_vm6 = vcmask 7168   ;;  %s133_s15 = int_to_ptr.hbm [resolvable:$true] %s132_s15 }
   0xd   :  { %v151_v3 = vld [vmem:[%s298_s2] ss:$0 sm:$0xff]  ;;  %s130_s12 = sshll.u32 %s239_s11, 4  ;;  %s131_s12 = int_to_ptr.vmem [resolvable:$true] %s130_s12 }
   0xe   :  { %80 = vmatpush.msra.mxu0 %v55_v1  ;;  %v152_v6 = vld [vmem:[%s299_s3] ss:$0 sm:$0xff] }
   0xf   :  { %145 = vmatmul.msk.f32.vlgmr.msra.gmra.mxu0 %vm61_vm0, %v54_v2 }
  0x8c   :  { %v82_v4 = vpop.f32.mrf.mxu0 }
  0x8d   :  { %v83_v5 = vadd.f32 %v151_v3, %v82_v4 }
  0x8f   :  { %v85_v7 = vmax.f32 %v83_v5, 0.0 }
  0x91   :  { %v92_v8 = vmul.f32 %v152_v6, %v85_v7  ;;  %87 = vst.msk [vmem:[#allocation8] sm:$0xff] %vm86_vm1, %v85_v7 }
  0x92   :  { %135 = dma.vmem_to_hbm [thread:$0]  %s131_s12, 128, %s133_s15, [#allocation5]  }
  0x93   :  { %93 = vadd.xlane.f32.xlu0 %v92_v8 }
 0x106   :  { %v94_v10 = vpop.xlane.xlu0 %93 }
 0x107   :  { %v97_v11 = vadd.f32 %v96_v9, %v94_v10 }
 0x109   :  { %v98_v12 = vand.u32 2147483647, %v97_v11  ;;  %vm102_vm7 = vcmp.ge.f32.partialorder %v97_v11, 0.0 }
 0x10b   :  { %v99_v13 = vsub.f32 0.0, %v98_v12 }
 0x10d   :  { %v100_v14 = vmul.f32 1.442695, %v99_v13 }
 0x10f   :  { %153 = vpow2.f32 %v100_v14 }
 0x115   :  { %v154_v15 = vpop.eup %153 }
 0x116   :  { %v103_v16 = vadd.f32 1.0, %v154_v15 }
 0x118   :  { %155 = vrcp.f32 %v103_v16  ;;  %v115_v20 = vand.u32 2147483648, %v103_v16  ;;  %v113_v22 = vand.u32 2147483647, %v103_v16  ;;  %vm109_vm3 = vweird.f32 %v103_v16 }
 0x11a   :  { %v116_v24 = vor.u32 1.1754944e-38, %v115_v20  ;;  %vm114_vm5 = vcmp.eq.f32.partialorder %v113_v22, 8.507059e+37 }
 0x11e   :  { %v156_v17 = vpop.eup %155 }
 0x11f   :  { %v105_v18 = vmul.f32 %v156_v17, %v103_v16  ;;  %vm110_vm2 = vweird.f32 %v156_v17 }
 0x120   :  { %vm111_vm4 = vmor %vm109_vm3, %vm110_vm2 }
 0x121   :  { %v106_v19 = vsub.f32 1.0, %v105_v18 }
 0x123   :  { %v107_v21 = vmul.f32 %v156_v17, %v106_v19 }
 0x125   :  { %v108_v23 = vadd.f32 %v156_v17, %v107_v21 }
 0x127   :  { %v112_v25 = vsel %vm111_vm4, %v156_v17, %v108_v23 }
 0x128   :  { %v117_v26 = vsel %vm114_vm5, %v116_v24, %v112_v25 }
 0x129   :  { %v119_v27 = vmul.f32 %v154_v15, %v117_v26 }
 0x12b   :  { %v120_v28 = vsel %vm102_vm7, %v117_v26, %v119_v27 }
 0x12c   :  { %122 = vst.msk [vmem:[%s301_s5] sm:$0xff] %vm121_vm6, %v120_v28 }
 0x12d   :  { %233 = dma.done.wait [#allocation5], 128  }
 0x12e   :  { %234 = vsyncadd [#allocation5], 4294967168 }
 0x12f   :  { %142 = vsyncpa [#allocation4], 1 }
 0x130   :  { %143 = vsyncpa [#allocation7], 1 }
 0x131   :  { %144 = vsyncpa [#allocation5], 1 }

</bundles_post_ra>
